<compile_context>
chip_gen: v6e
topology: v6e:2x2x1
jax: 0.10.0
libtpu: 0.0.40
codegen_flags: <defaults>
</compile_context>

<pallas_src>
import functools

import jax
import jax.numpy as jnp
from jax.experimental import pallas as pl
from jax.experimental.pallas import tpu as pltpu

IN_FEATURES = 28 * 28   # 784
HIDDEN = 64
OUT_FEATURES = 10
OUT_PAD = 128           # lane-dense padded output width


def _round_up(n, m):
    return ((n + m - 1) // m) * m


def mlp_kernel(x_ref, w1_ref, b1_ref, w2_ref, b2_ref, o_ref):
    # Cast the f32 activation tile to bf16 in-kernel (free VPU filler).
    x_bf = x_ref[...].astype(jnp.bfloat16)                       # (tb, 784)
    # fc1: (tb, 784) bf16 @ (784, 64) bf16 -> (tb, 64) f32
    h = jnp.dot(x_bf, w1_ref[...], preferred_element_type=jnp.float32)
    h = jnp.maximum(h + b1_ref[...], 0.0)                        # bias + ReLU in f32
    # fc2: (tb, 64) bf16 @ (64, 128) bf16 -> (tb, 128) f32
    y = jnp.dot(h.astype(jnp.bfloat16), w2_ref[...],
                preferred_element_type=jnp.float32)
    o_ref[...] = (y + b2_ref[...]).astype(o_ref.dtype)


@functools.partial(jax.jit, static_argnames=("block_b",))
def net_forward(x, w1, b1, w2, b2, *, block_b=1024):
    """x: (B, 1, 28, 28) or (B, 784) float32. Returns (B, 10) float32.

    w1: (64, 784), b1: (64,), w2: (10, 64), b2: (10,)  (PyTorch layout).
    """
    x2d = x.reshape(-1, IN_FEATURES)               # torch: x.view(-1, 28*28)
    B = x2d.shape[0]

    # Batch tile: multiple of 8 (f32 sublanes); capped at ceil(B/2) so the
    # grid has >= 2 steps whenever B > 8 (megacore split on v7x), and capped
    # at block_b so the f32 double-buffer stays within scoped VMEM budgets.
    tb = min(block_b, _round_up(pl.cdiv(B, 2), 8))
    grid = (pl.cdiv(B, tb),)                        # partial final block OK

    # Weights once-per-call: (in, out) layout, bf16 for full-rate MXU.
    # Biases stay f32 for the f32 epilogue.
    w1t = w1.T.astype(jnp.bfloat16)                              # (784, 64)
    w2_pad = jnp.zeros((HIDDEN, OUT_PAD), jnp.bfloat16)          # (64, 128)
    w2_pad = w2_pad.at[:, :OUT_FEATURES].set(w2.T.astype(jnp.bfloat16))
    b1_2d = b1.reshape(1, HIDDEN).astype(jnp.float32)            # (1, 64)
    b2_pad = jnp.zeros((1, OUT_PAD), jnp.float32)                # (1, 128)
    b2_pad = b2_pad.at[0, :OUT_FEATURES].set(b2.astype(jnp.float32))

    out = pl.pallas_call(
        mlp_kernel,
        out_shape=jax.ShapeDtypeStruct((B, OUT_PAD), jnp.float32),
        grid=grid,
        in_specs=[
            pl.BlockSpec((tb, IN_FEATURES), lambda i: (i, 0)),       # streamed x tile (f32)
            pl.BlockSpec((IN_FEATURES, HIDDEN), lambda i: (0, 0)),   # resident w1 (in, out)
            pl.BlockSpec((1, HIDDEN), lambda i: (0, 0)),             # resident b1
            pl.BlockSpec((HIDDEN, OUT_PAD), lambda i: (0, 0)),       # resident w2 (padded)
            pl.BlockSpec((1, OUT_PAD), lambda i: (0, 0)),            # resident b2 (padded)
        ],
        out_specs=pl.BlockSpec((tb, OUT_PAD), lambda i: (i, 0)),
        compiler_params=pltpu.CompilerParams(
            dimension_semantics=("parallel",)),
    )(x2d.astype(jnp.float32), w1t, b1_2d, w2_pad, b2_pad)

    # Padded w2 columns / b2 lanes are exactly zero, so lanes 10..127 are 0.
    return out[:, :OUT_FEATURES]


def init_params(key):
    """Deterministic init matching nn.Linear shapes (out, in) / (out,)."""
    k1, k2, k3, k4 = jax.random.split(key, 4)
    bound1 = 1.0 / (IN_FEATURES ** 0.5)
    bound2 = 1.0 / (HIDDEN ** 0.5)
    w1 = jax.random.uniform(k1, (HIDDEN, IN_FEATURES), jnp.float32, -bound1, bound1)
    b1 = jax.random.uniform(k2, (HIDDEN,), jnp.float32, -bound1, bound1)
    w2 = jax.random.uniform(k3, (OUT_FEATURES, HIDDEN), jnp.float32, -bound2, bound2)
    b2 = jax.random.uniform(k4, (OUT_FEATURES,), jnp.float32, -bound2, bound2)
    return w1, b1, w2, b2


def _reference_bf16(x2d, w1, b1, w2, b2):
    """Reference with the same bf16 cast points as the kernel."""
    xb = x2d.astype(jnp.bfloat16).astype(jnp.float32)
    w1b = w1.astype(jnp.bfloat16).astype(jnp.float32)
    w2b = w2.astype(jnp.bfloat16).astype(jnp.float32)
    h = jnp.maximum(xb @ w1b.T + b1, 0.0)
    return h.astype(jnp.bfloat16).astype(jnp.float32) @ w2b.T + b2


if __name__ == "__main__":
    key = jax.random.PRNGKey(0)
    k_x, k_p, k_x2 = jax.random.split(key, 3)
    w1, b1, w2, b2 = init_params(k_p)

    # Small MNIST-like batch: (B, C, H, W) = (2, 1, 28, 28).
    x = jax.random.normal(k_x, (2, 1, 28, 28), dtype=jnp.float32)
    out = jax.block_until_ready(net_forward(x, w1, b1, w2, b2))
    assert out.shape == (2, OUT_FEATURES)

    x2d = x.reshape(-1, IN_FEATURES)
    # Loose check vs pure-f32 PyTorch math (kernel uses bf16 matmul inputs).
    ref_f32 = jnp.maximum(x2d @ w1.T + b1, 0.0) @ w2.T + b2
    assert jnp.allclose(out, ref_f32, atol=3e-2, rtol=3e-2)
    # Tight check vs bf16-cast reference (isolates kernel structure).
    assert jnp.allclose(out, _reference_bf16(x2d, w1, b1, w2, b2),
                        atol=1e-3, rtol=1e-3)

    # Exercise the multi-step grid + partial final block path (B=100 -> tb=56,
    # grid=(2,), last block masked).
    xl = jax.random.normal(k_x2, (100, 1, 28, 28), dtype=jnp.float32)
    out_l = jax.block_until_ready(net_forward(xl, w1, b1, w2, b2))
    assert out_l.shape == (100, OUT_FEATURES)
    assert jnp.allclose(
        out_l, _reference_bf16(xl.reshape(-1, IN_FEATURES), w1, b1, w2, b2),
        atol=1e-3, rtol=1e-3)

    print("KERNEL_OK")
</pallas_src>

<mosaic_0001>
module attributes {stable_mosaic.version = 11 : i64} {
  func.func @mlp_kernel(%arg0: i32, %arg1: memref<8x784xf32, #tpu.memory_space<vmem>>, %arg2: memref<784x64xbf16, #tpu.memory_space<vmem>>, %arg3: memref<1x64xf32, #tpu.memory_space<vmem>>, %arg4: memref<64x128xbf16, #tpu.memory_space<vmem>>, %arg5: memref<1x128xf32, #tpu.memory_space<vmem>>, %arg6: memref<8x128xf32, #tpu.memory_space<vmem>>) attributes {dimension_semantics = [#tpu.dimension_semantics<parallel>], iteration_bounds = array<i64: 1>, scalar_prefetch = 0 : i64, scratch_operands = 0 : i64, tpu.core_type = #tpu.core_type<tc>, window_params = [{transform_indices = @transform_0, window_bounds = array<i64: 8, 784>}, {pipeline_mode = #tpu.pipeline_mode<synchronous>, transform_indices = @transform_1, window_bounds = array<i64: 784, 64>}, {pipeline_mode = #tpu.pipeline_mode<synchronous>, transform_indices = @transform_2, window_bounds = array<i64: 1, 64>}, {pipeline_mode = #tpu.pipeline_mode<synchronous>, transform_indices = @transform_3, window_bounds = array<i64: 64, 128>}, {pipeline_mode = #tpu.pipeline_mode<synchronous>, transform_indices = @transform_4, window_bounds = array<i64: 1, 128>}, {transform_indices = @transform_5, window_bounds = array<i64: 8, 128>}]} {
    %c0 = arith.constant 0 : index
    %c0_0 = arith.constant 0 : index
    %0 = vector.load %arg1[%c0, %c0_0] : memref<8x784xf32, #tpu.memory_space<vmem>>, vector<8x784xf32>
    %1 = arith.truncf %0 : vector<8x784xf32> to vector<8x784xbf16>
    %c0_1 = arith.constant 0 : index
    %c0_2 = arith.constant 0 : index
    %2 = vector.load %arg2[%c0_1, %c0_2] : memref<784x64xbf16, #tpu.memory_space<vmem>>, vector<784x64xbf16>
    %cst = arith.constant dense<0.000000e+00> : vector<8x64xf32>
    %3 = tpu.matmul %1, %2, %cst {dimension_numbers = #tpu.dot_dimension_numbers<[1], [0], [0], [1], [0, 0, 1, 1], [], []>} : vector<8x784xbf16>, vector<784x64xbf16>, vector<8x64xf32> -> vector<8x64xf32>
    %c0_3 = arith.constant 0 : index
    %c0_4 = arith.constant 0 : index
    %4 = vector.load %arg3[%c0_3, %c0_4] : memref<1x64xf32, #tpu.memory_space<vmem>>, vector<1x64xf32>
    %5 = vector.broadcast %4 : vector<1x64xf32> to vector<8x64xf32>
    %6 = arith.addf %3, %5 : vector<8x64xf32>
    %cst_5 = arith.constant 0.000000e+00 : f32
    %7 = vector.broadcast %cst_5 : f32 to vector<8x64xf32>
    %8 = arith.maximumf %6, %7 : vector<8x64xf32>
    %9 = arith.truncf %8 : vector<8x64xf32> to vector<8x64xbf16>
    %c0_6 = arith.constant 0 : index
    %c0_7 = arith.constant 0 : index
    %10 = vector.load %arg4[%c0_6, %c0_7] : memref<64x128xbf16, #tpu.memory_space<vmem>>, vector<64x128xbf16>
    %cst_8 = arith.constant dense<0.000000e+00> : vector<8x128xf32>
    %11 = tpu.matmul %9, %10, %cst_8 {dimension_numbers = #tpu.dot_dimension_numbers<[1], [0], [0], [1], [0, 0, 1, 1], [], []>} : vector<8x64xbf16>, vector<64x128xbf16>, vector<8x128xf32> -> vector<8x128xf32>
    %c0_9 = arith.constant 0 : index
    %c0_10 = arith.constant 0 : index
    %12 = vector.load %arg5[%c0_9, %c0_10] : memref<1x128xf32, #tpu.memory_space<vmem>>, vector<1x128xf32>
    %13 = vector.broadcast %12 : vector<1x128xf32> to vector<8x128xf32>
    %14 = arith.addf %11, %13 : vector<8x128xf32>
    %c0_11 = arith.constant 0 : index
    %c0_12 = arith.constant 0 : index
    %15 = vector.load %arg6[%c0_11, %c0_12] : memref<8x128xf32, #tpu.memory_space<vmem>>, vector<8x128xf32>
    tpu.vector_store %arg6[%c0_11, %c0_12], %14 {strides = array<i32>} : memref<8x128xf32, #tpu.memory_space<vmem>>, vector<8x128xf32>,
    return
  }
  func.func @transform_0(%arg0: i32) -> (i32, i32) {
    %c0_i32 = arith.constant 0 : i32
    %c0_i32_0 = arith.constant 0 : i32
    return %arg0, %c0_i32 : i32, i32
  }
  func.func @transform_1(%arg0: i32) -> (i32, i32) {
    %c0_i32 = arith.constant 0 : i32
    %c0_i32_0 = arith.constant 0 : i32
    %c0_i32_1 = arith.constant 0 : i32
    return %c0_i32, %c0_i32_0 : i32, i32
  }
  func.func @transform_2(%arg0: i32) -> (i32, i32) {
    %c0_i32 = arith.constant 0 : i32
    %c0_i32_0 = arith.constant 0 : i32
    %c0_i32_1 = arith.constant 0 : i32
    return %c0_i32, %c0_i32_0 : i32, i32
  }
  func.func @transform_3(%arg0: i32) -> (i32, i32) {
    %c0_i32 = arith.constant 0 : i32
    %c0_i32_0 = arith.constant 0 : i32
    %c0_i32_1 = arith.constant 0 : i32
    return %c0_i32, %c0_i32_0 : i32, i32
  }
  func.func @transform_4(%arg0: i32) -> (i32, i32) {
    %c0_i32 = arith.constant 0 : i32
    %c0_i32_0 = arith.constant 0 : i32
    %c0_i32_1 = arith.constant 0 : i32
    return %c0_i32, %c0_i32_0 : i32, i32
  }
  func.func @transform_5(%arg0: i32) -> (i32, i32) {
    %c0_i32 = arith.constant 0 : i32
    %c0_i32_0 = arith.constant 0 : i32
    return %arg0, %c0_i32 : i32, i32
  }
}

</mosaic_0001>

<bundles_post_ra>
// kernel: net_forward.1
= control target key start
LH: loop header
LB: loop body
LE: loop exit
PB: predicated region body
PF: predicated region fallthrough
CT: control target
= control target key end

     0   :  { %10 = vsyncpa [#allocation3], 0  ;;  %v45_v28 = vlaneseq  ;;  %v1029_v33 = vmov 1983009808   ;;  %v1030_v43 = vmov 0.0   ;;  %vm1031_vm0 = vmmov 0   ;;  %s1266_s0 = inlined_call_operand.vmem [shape: f32[2,784], index: 0, kind: input, shape index: {}]   ;;  %s1267_s1 = inlined_call_operand.vmem [shape: bf16[784,64], index: 1, kind: input, shape index: {}]   ;;  %s1268_s2 = inlined_call_operand.vmem [shape: f32[1,64], index: 2, kind: input, shape index: {}]   ;;  %s1269_s3 = inlined_call_operand.vmem [shape: bf16[64,128], index: 3, kind: input, shape index: {}]   ;;  %s1270_s4 = inlined_call_operand.vmem [shape: f32[1,128], index: 4, kind: input, shape index: {}]   ;;  %s1271_s5 = inlined_call_operand.hbm [shape: f32[2,128], index: 5, kind: output, shape index: {}]  }
   0x1   :  { %v942_v0 = vld [vmem:[%s1267_s1 + $0x78] sm:$0xff]   ;;  %v946_v4 = vld [vmem:[%s1267_s1 + $0x70] sm:$0xff]   ;;  %v950_v8 = vld [vmem:[%s1267_s1 + $0x68] sm:$0xff]   ;;  %v43_v34 = vunpack.c.l.s4 %v1029_v33  ;;  %vm522_vm1 = vcmask 130048   ;;  %vm727_vm2 = vcmask 523264  }
   0x2   :  { %v943_v1 = vld [vmem:[%s1267_s1 + $0x38] sm:$0xff]   ;;  %845 = vmatprep.subr.bf16.mxu0 %v942_v0  ;;  %v947_v5 = vld [vmem:[%s1267_s1 + $0x30] sm:$0xff]   ;;  %v951_v9 = vld [vmem:[%s1267_s1 + $0x28] sm:$0xff]   ;;  %v46_v35 = vshrl.u32 %v45_v28, 7 }
   0x3   :  { %v944_v2 = vld [vmem:[%s1267_s1 + $0xf8] sm:$0xff]   ;;  %846 = vmatpush3.bf16.msra.mxu0 %v943_v1  ;;  %v948_v6 = vld [vmem:[%s1267_s1 + $0xf0] sm:$0xff]   ;;  %v952_v10 = vld [vmem:[%s1267_s1 + $0xe8] sm:$0xff]   ;;  %v44_v37 = vunpack.c.0.s8 %v43_v34 }
   0x4   :  { %v945_v3 = vld [vmem:[%s1267_s1 + $0xb8] sm:$0xff]   ;;  %867 = vmatprep.subr.bf16.mxu1 %v944_v2  ;;  %847 = vmatprep.subr.bf16.mxu0 %v946_v4  ;;  %v949_v7 = vld [vmem:[%s1267_s1 + $0xb0] sm:$0xff]   ;;  %v953_v11 = vld [vmem:[%s1267_s1 + $0xa8] sm:$0xff]  }
   0x5   :  { %868 = vmatpush3.bf16.msra.mxu1 %v945_v3  ;;  %v954_v12 = vld [vmem:[%s1267_s1 + $0x60] sm:$0xff]   ;;  %v958_v16 = vld [vmem:[%s1267_s1 + $0x58] sm:$0xff]   ;;  %v962_v20 = vld [vmem:[%s1267_s1 + $0x50] sm:$0xff]   ;;  %v47_v42 = vsub.s32 %v44_v37, %v46_v35 }
   0x6   :  { %869 = vmatprep.subr.bf16.mxu1 %v948_v6  ;;  %v955_v13 = vld [vmem:[%s1267_s1 + $0x20] sm:$0xff]   ;;  %v959_v17 = vld [vmem:[%s1267_s1 + $0x18] sm:$0xff]   ;;  %v963_v21 = vld [vmem:[%s1267_s1 + $0x10] sm:$0xff]  }
   0x7   :  { %848 = vmatpush3.bf16.msra.mxu0 %v947_v5  ;;  %v956_v14 = vld [vmem:[%s1267_s1 + $0xe0] sm:$0xff]   ;;  %v960_v18 = vld [vmem:[%s1267_s1 + $0xd8] sm:$0xff]   ;;  %v964_v22 = vld [vmem:[%s1267_s1 + $0xd0] sm:$0xff]  }
   0x8   :  { %849 = vmatprep.subr.bf16.mxu0 %v950_v8  ;;  %v957_v15 = vld [vmem:[%s1267_s1 + $0xa0] sm:$0xff]   ;;  %v961_v19 = vld [vmem:[%s1267_s1 + $0x98] sm:$0xff]   ;;  %v965_v23 = vld [vmem:[%s1267_s1 + $0x90] sm:$0xff]  }
   0x9   :  { %870 = vmatpush3.bf16.msra.mxu1 %v949_v7  ;;  %v966_v24 = vld [vmem:[%s1267_s1 + $0x48] sm:$0xff]   ;;  %v970_v29 = vld [vmem:[%s1267_s1 + $0x40] sm:$0xff]   ;;  %v978_v39 = vld [vmem:[%s1267_s1 + $0x178] sm:$0xff]  }
   0xa   :  { %871 = vmatprep.subr.bf16.mxu1 %v952_v10  ;;  %v967_v25 = vld [vmem:[%s1267_s1 + $0x8] sm:$0xff]   ;;  %v971_v30 = vld [vmem:[%s1267_s1] sm:$0xff]   ;;  %v981_v55 = vld [vmem:[%s1267_s1 + $0x138] sm:$0xff]  }
   0xb   :  { %850 = vmatpush3.bf16.msra.mxu0 %v951_v9  ;;  %v968_v26 = vld [vmem:[%s1267_s1 + $0xc8] sm:$0xff]   ;;  %v972_v31 = vld [vmem:[%s1267_s1 + $0xc0] sm:$0xff]   ;;  %v982_v57 = vld [vmem:[%s1267_s1 + $0x170] sm:$0xff]  }
   0xc   :  { %851 = vmatprep.subr.bf16.mxu0 %v954_v12  ;;  %v969_v27 = vld [vmem:[%s1267_s1 + $0x88] sm:$0xff]   ;;  %v977_v38 = vld [vmem:[%s1267_s1 + $0x80] sm:$0xff]   ;;  %v983_v58 = vld [vmem:[%s1267_s1 + $0x130] sm:$0xff]  }
   0xd   :  { %872 = vmatpush3.bf16.msra.mxu1 %v953_v11  ;;  %v973_v32 = vld [vmem:[%s1266_s0] ss:$14 sps:$4 sm:$0xff]   ;;  %v975_v36 = vld [vmem:[%s1266_s0 + $0x1c] ss:$14 sps:$4 sm:$0xff]   ;;  %v979_v40 = vld [vmem:[%s1266_s0 + $0x4] ss:$14 sps:$4 sm:$0xff]  }
   0xe   :  { %873 = vmatprep.subr.bf16.mxu1 %v956_v14  ;;  %v980_v41 = vld [vmem:[%s1266_s0 + $0x20] ss:$14 sps:$4 sm:$0xff]   ;;  %v48_v44 = vrot.slane %v973_v32, %v47_v42  ;;  %v62_v45 = vrot.slane %v975_v36, %v47_v42  ;;  %v55_v46 = vrot.slane %v979_v40, %v47_v42  ;;  %v988_v0 = vld [vmem:[%s1267_s1 + $0x158] sm:$0xff]   ;;  %v1000_v2 = vld [vmem:[%s1266_s0 + $0x24] ss:$14 sps:$4 sm:$0xff]  }
   0xf   :  { %852 = vmatpush3.bf16.msra.mxu0 %v955_v13  ;;  %v69_v47 = vrot.slane %v980_v41, %v47_v42  ;;  %v984_v59 = vld [vmem:[%s1267_s1 + $0x168] sm:$0xff]   ;;  %v986_v61 = vld [vmem:[%s1267_s1 + $0x160] sm:$0xff]   ;;  %v98_v6 = vrot.slane %v1000_v2, %v47_v42  ;;  %v989_v10 = vld [vmem:[%s1267_s1 + $0x118] sm:$0xff]  }
  0x10   :  { %853 = vmatprep.subr.bf16.mxu0 %v958_v16  ;;  %v71_v48 = vcombine.high %v48_v44, %v62_v45  ;;  %v70_v49 = vcombine.low %v48_v44, %v62_v45  ;;  %v985_v60 = vld [vmem:[%s1267_s1 + $0x128] sm:$0xff]   ;;  %v996_v62 = vld [vmem:[%s1267_s1 + $0x180] sm:$0xff]   ;;  %v990_v12 = vld [vmem:[%s1267_s1 + $0x150] sm:$0xff]  }
  0x11   :  { %874 = vmatpush3.bf16.msra.mxu1 %v957_v15  ;;  %v73_v50 = vcombine.high %v55_v46, %v69_v47  ;;  %v72_v51 = vcombine.low %v55_v46, %v69_v47  ;;  %v987_v63 = vld [vmem:[%s1267_s1 + $0x120] sm:$0xff]   ;;  %v997_v1 = vld [vmem:[%s1266_s0 + $0x8] ss:$14 sps:$4 sm:$0xff]   ;;  %v999_v3 = vld [vmem:[%s1266_s0 + $0xc] ss:$14 sps:$4 sm:$0x33]  }
  0x12   :  { %875 = vmatprep.subr.bf16.mxu1 %v960_v18  ;;  %v117_v52 = vpack.c.bf16 %v71_v48, %v71_v48  ;;  %v116_v53 = vpack.c.bf16 %v70_v49, %v70_v49  ;;  %v1002_v4 = vld [vmem:[%s1266_s0 + $0x28] ss:$14 sps:$4 sm:$0x33]   ;;  %v84_v5 = vrot.slane %v997_v1, %v47_v42  ;;  %v91_v7 = vrot.slane %v999_v3, %v47_v42  ;;  %v994_v18 = vld [vmem:[%s1267_s1 + $0x140] sm:$0xff]  }
  0x13   :  { %854 = vmatpush3.bf16.msra.mxu0 %v959_v17  ;;  %v119_v54 = vpack.c.bf16 %v73_v50, %v73_v50  ;;  %v118_v56 = vpack.c.bf16 %v72_v51, %v72_v51  ;;  %v105_v8 = vrot.slane %v1002_v4, %v47_v42  ;;  %v991_v15 = vld [vmem:[%s1267_s1 + $0x110] sm:$0xff]   ;;  %v992_v16 = vld [vmem:[%s1267_s1 + $0x148] sm:$0xff]  }
  0x14   :  { %855 = vmatprep.subr.bf16.mxu0 %v962_v20  ;;  %558 = vmatprep.mubr.bf16.mxu0 %v117_v52  ;;  %v107_v9 = vcombine.high %v84_v5, %v98_v6  ;;  %v993_v17 = vld [vmem:[%s1267_s1 + $0x108] sm:$0xff]   ;;  %v995_v20 = vld [vmem:[%s1267_s1 + $0x100] sm:$0xff]  }
  0x15   :  { %876 = vmatpush3.bf16.msra.mxu1 %v961_v19  ;;  %598 = vmatprep.mubr.bf16.mxu1 %v119_v54  ;;  %v108_v11 = vcombine.low %v91_v7, %v105_v8  ;;  %v106_v19 = vcombine.low %v84_v5, %v98_v6  ;;  %v839_v52 = vld [vmem:[%s1270_s4] ss:$0 sm:$0xff] }
  0x16   :  { %877 = vmatprep.subr.bf16.mxu1 %v964_v22  ;;  %v121_v13 = vpack.c.bf16 %v107_v9, %v107_v9  ;;  %v1003_v22 = vld [vmem:[%s1269_s3 + $0x18] sm:$0xff]  }
  0x17   :  { %856 = vmatpush3.bf16.msra.mxu0 %v963_v21  ;;  %v122_v14 = vpack.c.bf16 %v108_v11, %v108_v11  ;;  %v120_v21 = vpack.c.bf16 %v106_v19, %v106_v19 }
  0x18   :  { %857 = vmatprep.subr.bf16.mxu0 %v966_v24  ;;  %v1005_v24 = vld [vmem:[%s1269_s3 + $0x8] sm:$0xff]  }
  0x19   :  { %878 = vmatpush3.bf16.msra.mxu1 %v965_v23  ;;  %v1004_v23 = vld [vmem:[%s1269_s3 + $0x10] sm:$0xff]  }
  0x1a   :  { %879 = vmatprep.subr.bf16.mxu1 %v968_v26 }
  0x1b   :  { %858 = vmatpush3.bf16.msra.mxu0 %v967_v25  ;;  %v1006_v25 = vld [vmem:[%s1269_s3] sm:$0xff]  }
  0x1c   :  { %859 = vmatprep.subr.bf16.mxu0 %v970_v29 }
  0x1d   :  { %880 = vmatpush3.bf16.msra.mxu1 %v969_v27 }
  0x1e   :  { %881 = vmatprep.subr.bf16.mxu1 %v972_v31 }
  0x1f   :  { %860 = vmatpush3.bf16.msra.mxu0 %v971_v30 }
  0x20   :  { %889 = vmatprep.subr.bf16.mxu0 %v978_v39  ;;  %v788_v39 = vld [vmem:[%s1268_s2] ss:$0 sm:$0xff] }
  0x21   :  { %882 = vmatpush3.bf16.msra.mxu1 %v977_v38 }
  0x22   :  { %918 = vmatprep.subr.bf16.mxu1 %v1030_v43  ;;  %559 = vmatmul.mubr.bf16.vlgmr.msra.gmra.mxu0 %v116_v53 }
  0x23   :  { %890 = vmatpush3.bf16.msra.mxu0 %v981_v55  ;;  %638 = vmatprep.mubr.bf16.mxu0 %v121_v13 }
  0x24   :  { %599 = vmatmul.mubr.bf16.vlgmr.msra.gmra.mxu1 %v118_v56  ;;  %891 = vmatprep.subr.bf16.mxu0 %v982_v57 }
  0x25   :  { %920 = vmatprep.mubr.msk.bf16.mxu1 %vm1031_vm0, %v1030_v43  ;;  %919 = vmatpush3.bf16.msra.mxu1 %v996_v62 }
  0x26   :  { %924 = vmatprep.subr.bf16.mxu1 %v1030_v43 }
  0x27   :  { %892 = vmatpush3.bf16.msra.mxu0 %v983_v58 }
  0x28   :  { %893 = vmatprep.subr.bf16.mxu0 %v984_v59 }
  0x2b   :  { %894 = vmatpush3.bf16.msra.mxu0 %v985_v60 }
  0x2c   :  { %895 = vmatprep.subr.bf16.mxu0 %v986_v61  ;;  %921 = vmatmul.mubr.msk.bf16.vlgmr.msra.gmra.mxu1 %vm522_vm1, %v122_v14 }
  0x2d   :  { %932 = vmatprep.mubr.msk.bf16.mxu1 %vm1031_vm0, %v1030_v43  ;;  %925 = vmatpush3.bf16.msra.mxu1 %v1003_v22 }
  0x2e   :  { %926 = vmatprep.subr.bf16.mxu1 %v1030_v43 }
  0x2f   :  { %896 = vmatpush3.bf16.msra.mxu0 %v987_v63 }
  0x30   :  { %897 = vmatprep.subr.bf16.mxu0 %v988_v0 }
  0x31   :  { %927 = vmatpush3.bf16.msra.mxu1 %v1004_v23 }
  0x32   :  { %928 = vmatprep.subr.bf16.mxu1 %v1030_v43 }
  0x33   :  { %898 = vmatpush3.bf16.msra.mxu0 %v989_v10 }
  0x34   :  { %899 = vmatprep.subr.bf16.mxu0 %v990_v12 }
  0x35   :  { %929 = vmatpush3.bf16.msra.mxu1 %v1005_v24 }
  0x36   :  { %930 = vmatprep.subr.bf16.mxu1 %v1030_v43 }
  0x37   :  { %900 = vmatpush3.bf16.msra.mxu0 %v991_v15 }
  0x38   :  { %901 = vmatprep.subr.bf16.mxu0 %v992_v16 }
  0x39   :  { %931 = vmatpush3.bf16.msra.mxu1 %v1006_v25 }
  0x3b   :  { %902 = vmatpush3.bf16.msra.mxu0 %v993_v17 }
  0x3c   :  { %903 = vmatprep.subr.bf16.mxu0 %v994_v18 }
  0x3f   :  { %904 = vmatpush3.bf16.msra.mxu0 %v995_v20 }
  0x42   :  { %639 = vmatmul.mubr.bf16.vlgmr.msra.gmra.mxu0 %v120_v21 }
  0xe2   :  { %v861_v26 = vpop.f32.mrf.mxu0 }
  0xe4   :  { %v883_v27 = vpop.f32.mrf.mxu1  ;;  %v862_v28 = vpop.f32.mrf.mxu0 }
  0xe5   :  { %v863_v38 = vadd.f32 %v862_v28, %v861_v26 }
  0xe6   :  { %v884_v29 = vpop.f32.mrf.mxu1  ;;  %v864_v30 = vpop.f32.mrf.mxu0 }
  0xe7   :  { %v561_v40 = vadd.f32 %v863_v38, %v788_v39  ;;  %v885_v41 = vadd.f32 %v884_v29, %v883_v27 }
  0xe8   :  { %v886_v31 = vpop.f32.mrf.mxu1  ;;  %v865_v32 = vpop.f32.mrf.mxu0 }
  0xe9   :  { %v601_v44 = vadd.f32 %v885_v41, %v561_v40 }
  0xea   :  { %v887_v33 = vpop.f32.mrf.mxu1 }
  0xec   :  { %v680_v34 = vpop.f32.mrf.mxu1 }
  0xee   :  { %v922_v35 = vpop.f32.mrf.mxu1 }
  0xf0   :  { %v683_v36 = vpop.f32.mrf.mxu1 }
  0xf2   :  { %v923_v37 = vpop.f32.mrf.mxu1 }
 0x102   :  { %v905_v42 = vpop.f32.mrf.mxu0 }
 0x104   :  { %v906_v43 = vpop.f32.mrf.mxu0 }
 0x105   :  { %v907_v45 = vadd.f32 %v906_v43, %v905_v42 }
 0x106   :  { %v908_v46 = vpop.f32.mrf.mxu0 }
 0x107   :  { %v641_v47 = vadd.f32 %v907_v45, %v601_v44 }
 0x108   :  { %v909_v48 = vpop.f32.mrf.mxu0 }
 0x109   :  { %v681_v49 = vadd.f32 %v680_v34, %v641_v47 }
 0x10b   :  { %v686_v50 = vmax.f32 %v681_v49, 0.0 }
 0x10d   :  { %v687_v51 = vpack.c.bf16 %v686_v50, %v686_v50 }
 0x10f   :  { %933 = vmatmul.mubr.msk.bf16.vlgmr.msra.gmra.mxu1 %vm727_vm2, %v687_v51 }
 0x1cf   :  { %v765_v53 = vpop.f32.mrf.mxu1 }
 0x1d0   :  { %v766_v54 = vadd.f32 %v839_v52, %v765_v53 }
 0x1d1   :  { %v934_v55 = vpop.f32.mrf.mxu1 }
 0x1d2   :  { %771 = vst [vmem:[#allocation2] sm:$0xff] %v766_v54 }
 0x1d3   :  { %v768_v56 = vpop.f32.mrf.mxu1 }
 0x1d5   :  { %v935_v57 = vpop.f32.mrf.mxu1 }
 0x1d6   :  { %776 = vsyncadd [#allocation3], 96  ;;  %s1032_s2 = smov [#allocation2]  }
 0x1d7   :  { %s777_s16 = sshll.u32 %s1032_s2, 4  ;;  %s778_s16 = int_to_ptr.vmem [resolvable:$true] %s777_s16 }
 0x1d8   :  { %s1007_s17 = scalar_lea.vmem %s778_s16, 32  ;;  %s1011_s18 = scalar_lea.vmem %s778_s16, 128 }
 0x1d9   :  { %p1008_p0 = scmp.ne.s32.totalorder %s778_s16, %s1007_s17  ;;  %p1012_p1 = scmp.lt.s32.totalorder %s778_s16, %s778_s16 }
 0x1da   :  { %p1013_p2 = scmp.lt.s32.totalorder %s1011_s18, %s1007_s17 }
 0x1dc   :  { %p1014_p3 = por %p1013_p2, %p1012_p1 }
 0x1de   :  { %p1015_p4 = pnand %p1014_p3, %p1008_p0 }
 0x1e0   :  { %1018 = shalt.err (!%p1015_p4)
}
 0x1e1   :  { %s1033_s19 = smov 32   ;;  %s1034_s4 = smov 2  }
 0x1e2   :  { %783 = dma.vmem_to_hbm [thread:$0]  %s778_s16, 32, %s1271_s5, [#allocation3], %s1033_s19, %s1033_s19, %s1034_s4  }
 0x1e3   :  { %1027 = dma.done.wait [#allocation3], 128  }
 0x1e4   :  { %1028 = vsyncadd [#allocation3], 4294967168 }
 0x1e5   :  { %787 = vsyncpa [#allocation3], 1 }

</bundles_post_ra>
